<compile_context>
chip_gen: v5e
topology: v5e:2x2
jax: 0.10.0
libtpu: 0.0.40
codegen_flags: <defaults>
</compile_context>

<pallas_src>
import jax
import jax.numpy as jnp
from jax import lax
from jax.experimental import pallas as pl
from jax.experimental.pallas import tpu as pltpu


# ---------------------------------------------------------------------------
# VMEM budget / tiling helpers (dtype- and generation-aware).
# ---------------------------------------------------------------------------
def _vmem_limit_bytes():
    """Scoped-VMEM limit: ~3/4 of physical VMEM, capped 64 MiB, floor 32 MiB."""
    phys = 64 * 1024 * 1024                      # conservative default (v7x)
    try:
        info = pltpu.get_tpu_info()
        phys = int(getattr(info, "vmem_capacity_bytes", phys))
    except Exception:
        pass
    return max(32 * 1024 * 1024, min(64 * 1024 * 1024, (3 * phys) // 4))


def _pick_tile(L, c, itemsize, budget_bytes):
    """Largest multiple-of-128 divisor of L with c * t * itemsize <= budget."""
    assert L % 128 == 0
    max_elems = max(128, budget_bytes // max(1, c * itemsize))
    best, t = 128, 128
    while t <= L:
        if L % t == 0 and t <= max_elems:
            best = t
        t += 128
    return best


# ---------------------------------------------------------------------------
# Kernel 1a: streamed partial sums of x and x^2 per (sample, split, channel).
# grid = (N, S, L_tiles); output blocks resident across the tile axis.
# ---------------------------------------------------------------------------
def _stats_kernel(x_ref, sum_ref, sq_ref):
    @pl.when(pl.program_id(2) == 0)
    def _():
        sum_ref[...] = jnp.zeros_like(sum_ref)
        sq_ref[...] = jnp.zeros_like(sq_ref)

    xb = x_ref[...].astype(jnp.float32)                       # (1, C, T)
    sum_ref[...] += jnp.sum(xb, axis=-1, keepdims=True)       # (1, C, 1)
    sq_ref[...] += jnp.sum(xb * xb, axis=-1, keepdims=True)   # (1, C, 1)


# ---------------------------------------------------------------------------
# Kernel 1b: folded-channel variant (small HW).  The 128 lanes mix G channels,
# so keep lane-resolved accumulators and reduce over N inside the kernel;
# the tiny segmented (channel, spatial) reduce happens in JAX afterwards.
# ---------------------------------------------------------------------------
def _stats_fold_kernel(x_ref, sum_ref, sq_ref):
    @pl.when(pl.program_id(0) == 0)
    def _():
        sum_ref[...] = jnp.zeros_like(sum_ref)
        sq_ref[...] = jnp.zeros_like(sq_ref)

    xb = x_ref[0].astype(jnp.float32)                         # (C_eff, 128)
    sum_ref[...] += xb
    sq_ref[...] += xb * xb


# ---------------------------------------------------------------------------
# Kernel 2: elementwise affine  out = x * scale - shift  (lane-dense blocks).
# ---------------------------------------------------------------------------
def _apply_kernel(x_ref, scale_ref, shift_ref, o_ref):
    xb = x_ref[...].astype(jnp.float32)                       # (1, C, T)
    o_ref[...] = (xb * scale_ref[...] - shift_ref[...]).astype(o_ref.dtype)


# ---------------------------------------------------------------------------
# Layout: present x as (N, C_eff, L) with L % 128 == 0 (lane-dense).
# meta = (mode, C, HW, G, L)
# ---------------------------------------------------------------------------
def _prep_layout(x):
    N, C, H, W = x.shape
    HW = H * W
    x3 = x.reshape(N, C, HW)
    if HW % 128 == 0:
        return x3, ("plain", C, HW, 1, HW)
    if 128 % HW == 0 and C % (128 // HW) == 0:
        G = 128 // HW
        return x3.reshape(N, C // G, G * HW), ("fold", C, HW, G, G * HW)
    Lp = pl.cdiv(HW, 128) * 128
    x3p = jnp.pad(x3, ((0, 0), (0, 0), (0, Lp - HW)))
    return x3p, ("pad", C, HW, 1, Lp)


def _unlayout(out3, meta, shape):
    mode, C, HW, _, _ = meta
    N, _, H, W = shape
    if mode == "pad":
        out3 = out3[:, :, :HW]
    return out3.reshape(N, C, H, W)


# ---------------------------------------------------------------------------
# Pass 1: per-channel mean / var (float32).
# ---------------------------------------------------------------------------
def _batch_stats(x3, meta, block_budget_bytes=None):
    mode, C, HW, G, L = meta
    N = x3.shape[0]
    limit = _vmem_limit_bytes()

    if mode == "fold":
        C_eff = C // G
        sums, sqs = pl.pallas_call(
            _stats_fold_kernel,
            out_shape=(jax.ShapeDtypeStruct((C_eff, 128), jnp.float32),
                       jax.ShapeDtypeStruct((C_eff, 128), jnp.float32)),
            grid=(N,),
            in_specs=[pl.BlockSpec((1, C_eff, 128), lambda n: (n, 0, 0))],
            out_specs=(pl.BlockSpec((C_eff, 128), lambda n: (0, 0)),
                       pl.BlockSpec((C_eff, 128), lambda n: (0, 0))),
            compiler_params=pltpu.CompilerParams(
                dimension_semantics=("arbitrary",),
                vmem_limit_bytes=limit),
        )(x3)
        total = jnp.sum(sums.reshape(C_eff, G, HW), axis=2).reshape(-1)
        total_sq = jnp.sum(sqs.reshape(C_eff, G, HW), axis=2).reshape(-1)
    else:
        C_eff = C
        budget = block_budget_bytes or min(8 << 20, limit // 3)
        t = _pick_tile(L, C_eff, x3.dtype.itemsize, budget)
        ntiles = L // t
        S = 2 if ntiles % 2 == 0 else 1        # keep both v7x TCs busy
        tps = ntiles // S
        sums, sqs = pl.pallas_call(
            _stats_kernel,
            out_shape=(jax.ShapeDtypeStruct((N * S, C_eff, 1), jnp.float32),
                       jax.ShapeDtypeStruct((N * S, C_eff, 1), jnp.float32)),
            grid=(N, S, tps),
            in_specs=[pl.BlockSpec((1, C_eff, t),
                                   lambda n, s, j: (n, 0, s * tps + j))],
            out_specs=(pl.BlockSpec((1, C_eff, 1),
                                    lambda n, s, j: (n * S + s, 0, 0)),
                       pl.BlockSpec((1, C_eff, 1),
                                    lambda n, s, j: (n * S + s, 0, 0))),
            compiler_params=pltpu.CompilerParams(
                dimension_semantics=("parallel", "parallel", "arbitrary"),
                vmem_limit_bytes=limit),
        )(x3)
        total = jnp.sum(sums, axis=(0, 2))       # tiny final reduce in JAX
        total_sq = jnp.sum(sqs, axis=(0, 2))

    cnt = jnp.float32(N * HW)                    # true count (pad zeros add 0)
    mean = total / cnt
    var = jnp.maximum(total_sq / cnt - mean * mean, 0.0)   # cancellation guard
    return mean, var


# ---------------------------------------------------------------------------
# Pass 2: out = x * scale - shift.
# ---------------------------------------------------------------------------
def _apply_affine(x3, meta, scale, shift, block_budget_bytes=None):
    mode, C, HW, G, L = meta
    N, C_eff, _ = x3.shape
    limit = _vmem_limit_bytes()
    budget = block_budget_bytes or min(8 << 20, limit // 5)
    t = _pick_tile(L, C_eff, x3.dtype.itemsize, budget)

    if mode == "fold":
        # Per-channel scale/shift broadcast across the folded lane axis.
        s3 = jnp.broadcast_to(scale.reshape(C_eff, G, 1).astype(jnp.float32),
                              (C_eff, G, HW)).reshape(1, C_eff, L)
        b3 = jnp.broadcast_to(shift.reshape(C_eff, G, 1).astype(jnp.float32),
                              (C_eff, G, HW)).reshape(1, C_eff, L)
    else:
        s3 = scale.reshape(1, C_eff, 1).astype(jnp.float32)
        b3 = shift.reshape(1, C_eff, 1).astype(jnp.float32)
    Ls = s3.shape[-1]

    return pl.pallas_call(
        _apply_kernel,
        out_shape=jax.ShapeDtypeStruct((N, C_eff, L), x3.dtype),
        grid=(N, L // t),
        in_specs=[pl.BlockSpec((1, C_eff, t), lambda n, j: (n, 0, j)),
                  pl.BlockSpec((1, C_eff, Ls), lambda n, j: (0, 0, 0)),
                  pl.BlockSpec((1, C_eff, Ls), lambda n, j: (0, 0, 0))],
        out_specs=pl.BlockSpec((1, C_eff, t), lambda n, j: (n, 0, j)),
        compiler_params=pltpu.CompilerParams(
            dimension_semantics=("parallel", "parallel"),
            vmem_limit_bytes=limit),
    )(x3, s3, b3)


# ---------------------------------------------------------------------------
# Forward wrappers reproducing bn / myBN semantics (functional buffers).
# ---------------------------------------------------------------------------
def bn_forward_train(x, gain, bias, stored_mean, stored_var,
                     *, eps=1e-5, momentum=0.1, block_budget_bytes=None):
    x3, meta = _prep_layout(x)
    mean_f32, var_f32 = _batch_stats(x3, meta, block_budget_bytes)
    # manual_bn casts mean/var back to x.dtype before fused_bn (torch parity;
    # this intentionally loses precision for bf16 inputs).
    mean = mean_f32.astype(x.dtype)
    var = var_f32.astype(x.dtype)
    scale = lax.rsqrt(var.astype(jnp.float32) + eps) * gain.astype(jnp.float32)
    shift = mean.astype(jnp.float32) * scale - bias.astype(jnp.float32)
    out = _unlayout(_apply_affine(x3, meta, scale, shift, block_budget_bytes),
                    meta, x.shape)
    # myBN running-stat update (non-accumulate_standing path), functional.
    new_mean = stored_mean * (1.0 - momentum) + mean * momentum
    new_var = stored_var * (1.0 - momentum) + var * momentum
    return out, new_mean, new_var


def bn_forward_eval(x, gain, bias, stored_mean, stored_var,
                    *, eps=1e-5, block_budget_bytes=None):
    x3, meta = _prep_layout(x)
    scale = lax.rsqrt(stored_var.astype(jnp.float32) + eps) * gain.astype(jnp.float32)
    shift = stored_mean.astype(jnp.float32) * scale - bias.astype(jnp.float32)
    return _unlayout(_apply_affine(x3, meta, scale, shift, block_budget_bytes),
                     meta, x.shape)


# ---------------------------------------------------------------------------
# Pure-JAX reference mirroring manual_bn + fused_bn (PyTorch spec).
# ---------------------------------------------------------------------------
def _reference_train(x, gain, bias, eps):
    xf = x.astype(jnp.float32)
    m = jnp.mean(xf, axis=(0, 2, 3), keepdims=True)
    m2 = jnp.mean(xf * xf, axis=(0, 2, 3), keepdims=True)
    var = m2 - m * m
    m = m.astype(x.dtype)
    var = var.astype(x.dtype)
    g = gain.reshape(1, -1, 1, 1)
    b = bias.reshape(1, -1, 1, 1)
    scale = lax.rsqrt(var + eps) * g
    shift = m * scale - b
    return x * scale - shift, m.reshape(-1), var.reshape(-1)


if __name__ == "__main__":
    eps, momentum = 1e-5, 0.1
    key = jax.random.PRNGKey(0)

    def check_case(case_key, shape, block_budget_bytes=None, check_eval=False):
        N, C, H, W = shape
        k1, k2, k3 = jax.random.split(case_key, 3)
        x = jax.random.normal(k1, shape, dtype=jnp.float32)
        gain = 1.0 + 0.1 * jax.random.normal(k2, (C,), dtype=jnp.float32)
        bias = 0.1 * jax.random.normal(k3, (C,), dtype=jnp.float32)
        stored_mean = jnp.zeros((C,), jnp.float32)
        stored_var = jnp.ones((C,), jnp.float32)

        out, new_mean, new_var = bn_forward_train(
            x, gain, bias, stored_mean, stored_var, eps=eps, momentum=momentum,
            block_budget_bytes=block_budget_bytes)
        out = jax.block_until_ready(out)

        ref_out, ref_m, ref_v = _reference_train(x, gain, bias, eps)
        assert out.shape == shape, (out.shape, shape)
        assert jnp.allclose(out, ref_out, atol=1e-4, rtol=1e-4), \
            f"train output mismatch {shape}"
        assert jnp.allclose(new_mean,
                            (1 - momentum) * stored_mean + momentum * ref_m,
                            atol=1e-5, rtol=1e-5), f"running mean mismatch {shape}"
        assert jnp.allclose(new_var,
                            (1 - momentum) * stored_var + momentum * ref_v,
                            atol=1e-5, rtol=1e-5), f"running var mismatch {shape}"

        if check_eval:
            out_eval = jax.block_until_ready(
                bn_forward_eval(x, gain, bias, ref_m, ref_v, eps=eps,
                                block_budget_bytes=block_budget_bytes))
            sc = lax.rsqrt(ref_v.reshape(1, -1, 1, 1) + eps) * gain.reshape(1, -1, 1, 1)
            sh = ref_m.reshape(1, -1, 1, 1) * sc - bias.reshape(1, -1, 1, 1)
            assert jnp.allclose(out_eval, x * sc - sh, atol=1e-4, rtol=1e-4), \
                f"eval mismatch {shape}"

    keys = jax.random.split(key, 4)
    # 1) Main case: HW multiple of 128 (plain path), train + eval.
    check_case(keys[0], (4, 8, 16, 16), check_eval=True)
    # 2) Multi-tile streaming + 2-way split of the reduction grid
    #    (tiny block budget forces grid=(N, 2, tiles) accumulation).
    check_case(keys[1], (2, 8, 32, 32), block_budget_bytes=8 * 1024)
    # 3) Small spatial (4x4): channels folded into the lane axis (G=8).
    check_case(keys[2], (2, 64, 4, 4))
    # 4) HW not dividing 128: zero-pad fallback path.
    check_case(keys[3], (2, 8, 5, 5))

    print("KERNEL_OK")
</pallas_src>

<mosaic_0001>
module attributes {stable_mosaic.version = 11 : i64} {
  func.func @_stats_kernel(%arg0: i32, %arg1: i32, %arg2: i32, %arg3: memref<1x8x256xf32, #tpu.memory_space<vmem>>, %arg4: memref<1x8x1xf32, #tpu.memory_space<vmem>>, %arg5: memref<1x8x1xf32, #tpu.memory_space<vmem>>) attributes {dimension_semantics = [#tpu.dimension_semantics<parallel>, #tpu.dimension_semantics<parallel>, #tpu.dimension_semantics<arbitrary>], iteration_bounds = array<i64: 4, 1, 1>, scalar_prefetch = 0 : i64, scratch_operands = 0 : i64, tpu.core_type = #tpu.core_type<tc>, window_params = [{transform_indices = @transform_0, window_bounds = array<i64: 1, 8, 256>}, {transform_indices = @transform_1, window_bounds = array<i64: 1, 8, 1>}, {transform_indices = @transform_2, window_bounds = array<i64: 1, 8, 1>}]} {
    %c0_i32 = arith.constant 0 : i32
    %0 = arith.cmpi eq, %arg2, %c0_i32 : i32
    %1 = arith.extui %0 : i1 to i32
    %c0_i32_0 = arith.constant 0 : i32
    %2 = arith.cmpi ne, %1, %c0_i32_0 : i32
    scf.if %2 {
      %cst_16 = arith.constant 0.000000e+00 : f32
      %15 = vector.broadcast %cst_16 : f32 to vector<1x8x1xf32>
      %c0_17 = arith.constant 0 : index
      %c0_18 = arith.constant 0 : index
      %c0_19 = arith.constant 0 : index
      %16 = vector.load %arg4[%c0_17, %c0_18, %c0_19] : memref<1x8x1xf32, #tpu.memory_space<vmem>>, vector<1x8x1xf32>
      tpu.vector_store %arg4[%c0_17, %c0_18, %c0_19], %15 {strides = array<i32>} : memref<1x8x1xf32, #tpu.memory_space<vmem>>, vector<1x8x1xf32>,
      %cst_20 = arith.constant 0.000000e+00 : f32
      %17 = vector.broadcast %cst_20 : f32 to vector<1x8x1xf32>
      %c0_21 = arith.constant 0 : index
      %c0_22 = arith.constant 0 : index
      %c0_23 = arith.constant 0 : index
      %18 = vector.load %arg5[%c0_21, %c0_22, %c0_23] : memref<1x8x1xf32, #tpu.memory_space<vmem>>, vector<1x8x1xf32>
      tpu.vector_store %arg5[%c0_21, %c0_22, %c0_23], %17 {strides = array<i32>} : memref<1x8x1xf32, #tpu.memory_space<vmem>>, vector<1x8x1xf32>,
    } else {
    }
    %c0 = arith.constant 0 : index
    %c0_1 = arith.constant 0 : index
    %c0_2 = arith.constant 0 : index
    %3 = vector.load %arg3[%c0, %c0_1, %c0_2] : memref<1x8x256xf32, #tpu.memory_space<vmem>>, vector<1x8x256xf32>
    %c0_3 = arith.constant 0 : index
    %c0_4 = arith.constant 0 : index
    %c0_5 = arith.constant 0 : index
    %4 = vector.load %arg4[%c0_3, %c0_4, %c0_5] : memref<1x8x1xf32, #tpu.memory_space<vmem>>, vector<1x8x1xf32>
    %cst = arith.constant dense<0.000000e+00> : vector<1x8xf32>
    %5 = vector.multi_reduction <add>, %3, %cst [2] : vector<1x8x256xf32> to vector<1x8xf32>
    %6 = vector.shape_cast %5 : vector<1x8xf32> to vector<1x8x1xf32>
    %7 = arith.addf %4, %6 : vector<1x8x1xf32>
    %c0_6 = arith.constant 0 : index
    %c0_7 = arith.constant 0 : index
    %c0_8 = arith.constant 0 : index
    %8 = vector.load %arg4[%c0_6, %c0_7, %c0_8] : memref<1x8x1xf32, #tpu.memory_space<vmem>>, vector<1x8x1xf32>
    tpu.vector_store %arg4[%c0_6, %c0_7, %c0_8], %7 {strides = array<i32>} : memref<1x8x1xf32, #tpu.memory_space<vmem>>, vector<1x8x1xf32>,
    %c0_9 = arith.constant 0 : index
    %c0_10 = arith.constant 0 : index
    %c0_11 = arith.constant 0 : index
    %9 = vector.load %arg5[%c0_9, %c0_10, %c0_11] : memref<1x8x1xf32, #tpu.memory_space<vmem>>, vector<1x8x1xf32>
    %10 = arith.mulf %3, %3 : vector<1x8x256xf32>
    %cst_12 = arith.constant dense<0.000000e+00> : vector<1x8xf32>
    %11 = vector.multi_reduction <add>, %10, %cst_12 [2] : vector<1x8x256xf32> to vector<1x8xf32>
    %12 = vector.shape_cast %11 : vector<1x8xf32> to vector<1x8x1xf32>
    %13 = arith.addf %9, %12 : vector<1x8x1xf32>
    %c0_13 = arith.constant 0 : index
    %c0_14 = arith.constant 0 : index
    %c0_15 = arith.constant 0 : index
    %14 = vector.load %arg5[%c0_13, %c0_14, %c0_15] : memref<1x8x1xf32, #tpu.memory_space<vmem>>, vector<1x8x1xf32>
    tpu.vector_store %arg5[%c0_13, %c0_14, %c0_15], %13 {strides = array<i32>} : memref<1x8x1xf32, #tpu.memory_space<vmem>>, vector<1x8x1xf32>,
    return
  }
  func.func @transform_0(%arg0: i32, %arg1: i32, %arg2: i32) -> (i32, i32, i32) {
    %c1_i32 = arith.constant 1 : i32
    %0 = arith.muli %arg1, %c1_i32 : i32
    %1 = arith.addi %0, %arg2 : i32
    %c0_i32 = arith.constant 0 : i32
    %c0_i32_0 = arith.constant 0 : i32
    return %arg0, %c0_i32, %1 : i32, i32, i32
  }
  func.func @transform_1(%arg0: i32, %arg1: i32, %arg2: i32) -> (i32, i32, i32) {
    %c1_i32 = arith.constant 1 : i32
    %0 = arith.muli %arg0, %c1_i32 : i32
    %1 = arith.addi %0, %arg1 : i32
    %c0_i32 = arith.constant 0 : i32
    %c0_i32_0 = arith.constant 0 : i32
    %c0_i32_1 = arith.constant 0 : i32
    return %1, %c0_i32, %c0_i32_0 : i32, i32, i32
  }
  func.func @transform_2(%arg0: i32, %arg1: i32, %arg2: i32) -> (i32, i32, i32) {
    %c1_i32 = arith.constant 1 : i32
    %0 = arith.muli %arg0, %c1_i32 : i32
    %1 = arith.addi %0, %arg1 : i32
    %c0_i32 = arith.constant 0 : i32
    %c0_i32_0 = arith.constant 0 : i32
    %c0_i32_1 = arith.constant 0 : i32
    return %1, %c0_i32, %c0_i32_0 : i32, i32, i32
  }
}

</mosaic_0001>

<bundles_post_ra>
// kernel: tpu_custom_call.1
= control target key start
LH: loop header
LB: loop body
LE: loop exit
PB: predicated region body
PF: predicated region fallthrough
CT: control target
= control target key end

     0   :  { %8 = vsyncpa [#allocation3], 0  ;;  %s615_s0 = inlined_call_operand.hbm [shape: f32[4,8,256], index: 0, kind: input, shape index: {}]   ;;  %s616_s1 = inlined_call_operand.vmem [shape: f32[4,8,1], index: 1, kind: output, shape index: {0}]   ;;  %s617_s2 = inlined_call_operand.vmem [shape: f32[4,8,1], index: 2, kind: output, shape index: {1}]  }
   0x1   :  { %10 = vsyncpa [#allocation3 + $0x1], 0  ;;  %s520_s9 = smov 0   ;;  %s522_s10 = smov 0  }
   0x2   :  { %s524_s11 = smov 0   ;;  %s526_s12 = smov 0  }
   0x3   :  { %s528_s13 = smov 0   ;;  %s530_s14 = smov 0  }
   0x4 LB: > { %s352_s15 = sadd.s32 4294967295, %s502_s14   ;;  %s35_s16 = sadd.s32 1, %s498_s13  ;;  %s502_s14 = sphi %s530_s14, %s16_s14   ;;  %s498_s13 = sphi %s528_s13, %s624_s13   ;;  %s494_s12 = sphi %s526_s12, %s623_s12   ;;  %s490_s11 = sphi %s524_s11, %s622_s11   ;;  %s486_s10 = sphi %s522_s10, %s621_s10   ;;  %s482_s9 = sphi %s520_s9, %s620_s9  }
   0x5   : > { %p37_p0 = scmp.ge.s32.totalorder %s35_s16, 4  ;;  %s46_s17 = sadd.s32 1, %s490_s11 }
   0x6   : > { %p53_p1 = scmp.ne.s32.totalorder %s490_s11, %s486_s10  ;;  %p54_p2 = scmp.eq.s32.totalorder %s502_s14, 0 }
   0x7   : > { %s626_s16 = smov (%p37_p0, %s35_s16), 0  ;;  %p59_p4 = scmp.ne.s32.totalorder %s486_s10, %s482_s9 }
   0x8   : > { %p556_p3 = por %p54_p2, %p53_p1  ;;  %s41_s19 = ssub.s32 %s498_s13, %s626_s16 }
   0x9   : > { %p60_p5 = scmp.eq.s32.totalorder %s352_s15, 0  ;;  %p44_p6 = scmp.eq.s32.totalorder %s41_s19, 0 }
   0xa   : > { %p372_p8 = scmp.lt.s32.totalorder %s502_s14, 4  ;;  %s139_s22 = sand.u32 1, %s490_s11  }
   0xb   : > { %p563_p7 = por %p60_p5, %p59_p4  ;;  %s365_s23 = sshll.u32 %s498_s13, 4 }
   0xc   : > { %s569_s21 = scalar_select %p44_p6, %s490_s11, %s46_s17  }
   0xd   : > { %s356_s24 = sshll.u32 %s139_s22, 4  ;;  %s151_s27 = scalar_lea.hbm %s615_s0, %s365_s23 }
   0xe   : > { %s153_s28 = sshll.u32 %s151_s27, 4  ;;  %s143_s29 = scalar_lea.vmem [#allocation2], %s356_s24  ;;  %s154_s28 = int_to_ptr.hbm [resolvable:$true] %s153_s28 }
   0xf   : > { %s155_s30 = sshll.u32 %s143_s29, 4  ;;  %p369_p9 = pnand %p372_p8, %p556_p3  ;;  %s156_s30 = int_to_ptr.vmem [resolvable:$true] %s155_s30 }
  0x10   : > { %p359_p10 = scmp.ge.s32.totalorder %s502_s14, 1  ;;  %p160_p11 = scmp.lt.s32.totalorder %s502_s14, 5 }
  0x11   : > { %s140_s3 = scalar_lea.sflag [#allocation3], %s139_s22 }
  0x12   : > { %371 = dma.hbm_to_vmem [thread:$0]  (!%p369_p9), %s154_s28, 256, %s156_s30, %s140_s3  }
  0x13   : > { %p161_p12 = pnand %p359_p10, %p160_p11 }
  0x14   : > { %s166_s4 = sand.u32 (!%p161_p12), 1, %s486_s10  }
  0x15   : > { %164 = sbr.rel (%p161_p12) target bundleno = 157 (0x9d), region = 24  ;;  %s360_s5 = sshll.u32 (!%p161_p12), %s166_s4, 4 }
  0x16   : > { %s167_s6 = scalar_lea.sflag (!%p161_p12), [#allocation3], %s166_s4  ;;  %s170_s7 = scalar_lea.vmem (!%p161_p12), [#allocation2], %s360_s5 }
  0x1a   : > { %477 = dma.done.wait (%p563_p7), %s167_s6, 256  }
  0x1b   : > { %479 = vsyncadd (%p563_p7), %s167_s6, 4294967040  ;;  %p200_p13 = scmp.lt.s32.totalorder %s494_s12, 3  ;;  %vm215_vm0 = vcmask 7168   ;;  %v504_v0 = vmov 0.0   ;;  %v218_v1 = vld [vmem:[%s170_s7] sm:$0xff]  ;;  %v219_v2 = vld [vmem:[%s170_s7 + $0x8] sm:$0xff] }
  0x1c   : > { %v221_v3 = vadd.f32 %v219_v2, %v218_v1  ;;  %v228_v4 = vmul.f32 %v218_v1, %v218_v1  ;;  %v229_v5 = vmul.f32 %v219_v2, %v219_v2 }
  0x1d   : > { %s628_s12 = smov (!%p200_p13, %s494_s12), 3 }
  0x1e   : > { %s361_s8 = sshll.u32 %s628_s12, 3  ;;  %222 = vadd.xlane.f32.xlu0 %v221_v3  ;;  %v230_v6 = vadd.f32 %v229_v5, %v228_v4 }
  0x1f   : > { %s203_s17 = scalar_lea.vmem %s616_s1, %s361_s8  ;;  %s209_s22 = scalar_lea.vmem %s617_s2, %s361_s8 }
  0x20   : > { %216 = vst.msk [vmem:[%s203_s17] sm:$0xff] %vm215_vm0, %v504_v0 }
  0x21   : > { %217 = vst.msk [vmem:[%s209_s22] sm:$0xff] %vm215_vm0, %v504_v0 }
  0x26   : > { %231 = vadd.xlane.f32.xlu0 %v230_v6 }
  0x27   : > { %v220_v7 = vld [vmem:[%s203_s17] sm:$0xff] }
  0x28   : > { %v227_v10 = vld [vmem:[%s209_s22] sm:$0xff] }
  0x91   : > { %v223_v8 = vpop.xlane.xlu0 %222 }
  0x92   : > { %v224_v9 = vadd.f32 %v223_v8, %v220_v7 }
  0x94   : > { %226 = vst.msk [vmem:[%s203_s17] sm:$0xff] %vm215_vm0, %v224_v9 }
  0x99   : > { %v232_v11 = vpop.xlane.xlu0 %231 }
  0x9a   : > { %v233_v12 = vadd.f32 %v232_v11, %v227_v10 }
  0x9c   : > { %234 = vst.msk [vmem:[%s209_s22] sm:$0xff] %vm215_vm0, %v233_v12 }
  0x9d PF: > { %s16_s14 = sadd.s32 1, %s502_s14   ;;  %s620_s9 = smov %s486_s10 }
  0x9e   : > { %p13_p0 = scmp.ge.s32.totalorder %s16_s14, 6   ;;  %s621_s10 = smov %s490_s11 }
  0x9f   : > { %s622_s11 = smov %s569_s21  ;;  %s623_s12 = smov %s498_s13 }
  0xa0   : > { %s624_s13 = smov %s626_s16  ;;  %15 = sbr.rel (!%p13_p0) target bundleno = 4 (0x4), region = 80 }
  0xa5   :  { %274 = vsyncpa [#allocation3], 1 }
  0xa6   :  { %276 = vsyncpa [#allocation3 + $0x1], 1 }

</bundles_post_ra>
